<compile_context>
chip_gen: v7x
topology: tpu7x:2x2x1
jax: 0.10.0
libtpu: 0.0.40
codegen_flags: <defaults>
</compile_context>

<pallas_src>
import jax
import jax.numpy as jnp
import numpy as np
from jax import lax
from jax.experimental import pallas as pl
from jax.experimental.pallas import tpu as pltpu


def _round_up(x, m):
    return ((x + m - 1) // m) * m


def _make_ce_err_kernel(n_valid):
    """Kernel 1: softmax over classes, per-class fg / |fg - p| maps, CE partials."""

    def kernel(logits_ref, labels_ref, err_ref, fg_ref, part_ref):
        i = pl.program_id(0)
        logits = logits_ref[...].astype(jnp.float32)          # [C, T]
        labels = labels_ref[...]                              # [1, T] int32
        C, T = logits.shape

        # softmax / log-softmax over the class (sublane) axis
        m = jnp.max(logits, axis=0, keepdims=True)            # [1, T]
        z = logits - m
        ez = jnp.exp(z)
        s = jnp.sum(ez, axis=0, keepdims=True)                # [1, T]
        p = ez / s
        log_p = z - jnp.log(s)

        class_ids = lax.broadcasted_iota(jnp.int32, (C, T), 0)
        onehot = (labels == class_ids).astype(jnp.float32)    # [C, T]

        # mask out padded points (beyond the true N)
        lane = lax.broadcasted_iota(jnp.int32, (1, T), 1)
        in_range = (i * T + lane) < n_valid                   # [1, T] bool
        pmask = in_range.astype(jnp.float32)

        fg = onehot * pmask
        err_ref[...] = jnp.abs(onehot - p) * pmask
        fg_ref[...] = fg

        # cross-entropy with ignore_index=0 (per-tile partial sums)
        nll = -jnp.sum(onehot * log_p, axis=0, keepdims=True)  # [1, T]
        valid = jnp.logical_and(labels != 0, in_range).astype(jnp.float32)
        ce_sum = jnp.sum(nll * valid)
        ce_cnt = jnp.sum(valid)

        out_lane = lax.broadcasted_iota(jnp.int32, (1, 128), 1)
        part_ref[...] = jnp.where(out_lane == 0, ce_sum,
                                  jnp.where(out_lane == 1, ce_cnt, 0.0))

    return kernel


def _lovasz_kernel(err_ref, fg_ref, gts_ref, out_ref, cum_ref, prev_ref, acc_ref):
    """Kernel 2: Lovasz-Softmax on pre-sorted (descending) errors.

    Sequential grid over point tiles; running cumsum(fg), previous jaccard and
    per-class dot products are carried in (C, 1) VMEM scratch."""
    i = pl.program_id(0)
    err = err_ref[...]                                        # [C, T]
    fg = fg_ref[...]                                          # [C, T]
    gts = gts_ref[...]                                        # [C, 1]
    C, T = err.shape

    @pl.when(i == 0)
    def _():
        cum_ref[...] = jnp.zeros_like(cum_ref)
        prev_ref[...] = jnp.zeros_like(prev_ref)
        acc_ref[...] = jnp.zeros_like(acc_ref)

    lane = lax.broadcasted_iota(jnp.int32, (C, T), 1)

    # inclusive prefix sum of fg along the point (lane) axis:
    # log2(T) roll + select + add steps (XLU + VPU, no N^2 masks / MXU).
    cs = fg
    d = 1
    while d < T:
        rolled = pltpu.roll(cs, shift=d, axis=1)
        cs = cs + jnp.where(lane >= d, rolled, 0.0)
        d *= 2
    cum_fg = cs + cum_ref[...]                                # add carry from prev tiles

    counts = (i * T + lane + 1).astype(jnp.float32)           # global 1-based position
    intersection = gts - cum_fg
    union = gts + (counts - cum_fg)
    jaccard = 1.0 - intersection / union

    # lovasz_grad: jaccard[k] - jaccard[k-1]; the first global element keeps
    # jaccard[0] (handled by the zero-initialized prev carry).
    prev = jnp.where(lane == 0, prev_ref[...],
                     pltpu.roll(jaccard, shift=1, axis=1))
    grad = jaccard - prev

    acc_ref[...] += jnp.sum(err * grad, axis=1, keepdims=True)   # [C, 1]
    cum_ref[...] = cum_fg[:, T - 1:T]
    prev_ref[...] = jaccard[:, T - 1:T]

    @pl.when(i == pl.num_programs(0) - 1)
    def _():
        present = (gts > 0.0).astype(jnp.float32)             # classes 'present'
        cnt = jnp.sum(present)
        total = jnp.sum(acc_ref[...] * present)
        out_ref[0, 0] = jnp.where(cnt > 0, total / jnp.maximum(cnt, 1.0), 0.0)


def sem_loss(logits, labels, ce_w=1.0, lov_w=1.0, tile_n=4096):
    """SemLoss.forward: {'sem_ce': ce_w*CE(ignore=0), 'sem_lov': lov_w*Lovasz}."""
    N, C = logits.shape

    tile_n = min(_round_up(tile_n, 128), _round_up(N, 128))
    n_pad = _round_up(N, tile_n)
    num_tiles = n_pad // tile_n

    # lane-dense [C, N] layout; keep native dtype (cast to f32 inside the kernel)
    logits_t = jnp.transpose(logits)                          # [C, N]
    labels2 = labels.reshape(1, N).astype(jnp.int32)          # [1, N]
    if n_pad != N:
        logits_t = jnp.pad(logits_t, ((0, 0), (0, n_pad - N)))
        labels2 = jnp.pad(labels2, ((0, 0), (0, n_pad - N)))

    errors, fg, ce_parts = pl.pallas_call(
        _make_ce_err_kernel(N),
        out_shape=(
            jax.ShapeDtypeStruct((C, n_pad), jnp.float32),
            jax.ShapeDtypeStruct((C, n_pad), jnp.float32),
            jax.ShapeDtypeStruct((1, num_tiles * 128), jnp.float32),
        ),
        grid=(num_tiles,),
        in_specs=[
            pl.BlockSpec((C, tile_n), lambda i: (0, i)),
            pl.BlockSpec((1, tile_n), lambda i: (0, i)),
        ],
        out_specs=(
            pl.BlockSpec((C, tile_n), lambda i: (0, i)),
            pl.BlockSpec((C, tile_n), lambda i: (0, i)),
            pl.BlockSpec((1, 128), lambda i: (0, i)),
        ),
        compiler_params=pltpu.CompilerParams(
            dimension_semantics=("parallel",)),
    )(logits_t, labels2)

    # tiny CE combine (per-tile partials -> scalar), guarded against all-ignored
    parts = ce_parts.reshape(num_tiles, 128)
    ce_sum = jnp.sum(parts[:, 0])
    ce_cnt = jnp.sum(parts[:, 1])
    ce = jnp.where(ce_cnt > 0, ce_sum / jnp.maximum(ce_cnt, 1.0), 0.0)

    # per-class totals (permutation invariant) + per-class descending sort of the
    # errors, carrying fg as payload in the same XLA sort pass.
    gts = jnp.sum(fg, axis=1, keepdims=True)                  # [C, 1]
    neg_sorted, fg_sorted = lax.sort((-errors, fg), dimension=1, num_keys=1)
    errors_sorted = -neg_sorted

    lovasz = pl.pallas_call(
        _lovasz_kernel,
        out_shape=jax.ShapeDtypeStruct((1, 1), jnp.float32),
        grid=(num_tiles,),
        in_specs=[
            pl.BlockSpec((C, tile_n), lambda i: (0, i)),
            pl.BlockSpec((C, tile_n), lambda i: (0, i)),
            pl.BlockSpec((C, 1), lambda i: (0, 0)),
        ],
        out_specs=pl.BlockSpec((1, 1), lambda i: (0, 0)),
        scratch_shapes=[
            pltpu.VMEM((C, 1), jnp.float32),   # running cumsum(fg) carry
            pltpu.VMEM((C, 1), jnp.float32),   # previous jaccard carry
            pltpu.VMEM((C, 1), jnp.float32),   # per-class dot accumulator
        ],
        compiler_params=pltpu.CompilerParams(
            dimension_semantics=("arbitrary",)),
    )(errors_sorted, fg_sorted, gts)

    return {"sem_ce": ce_w * ce, "sem_lov": lov_w * lovasz[0, 0]}


def _reference_sem_loss(logits, labels):
    """Plain-JAX port of the PyTorch SemLoss forward (self-check only)."""
    logits = logits.astype(jnp.float32)
    log_p = jax.nn.log_softmax(logits, axis=1)
    p = jnp.exp(log_p)

    valid = labels != 0
    nll = -jnp.take_along_axis(log_p, labels[:, None].astype(jnp.int32), axis=1)[:, 0]
    ce = jnp.sum(nll * valid) / jnp.maximum(jnp.sum(valid), 1)

    C = logits.shape[1]
    losses, present = [], []
    for c in range(C):
        fg = (labels == c).astype(jnp.float32)
        errs = jnp.abs(fg - p[:, c])
        order = jnp.argsort(-errs)
        e_s = errs[order]
        fg_s = fg[order]
        gts = jnp.sum(fg_s)
        inter = gts - jnp.cumsum(fg_s)
        union = gts + jnp.cumsum(1.0 - fg_s)
        jac = 1.0 - inter / union
        grad = jnp.concatenate([jac[:1], jac[1:] - jac[:-1]])
        losses.append(jnp.sum(e_s * grad))
        present.append(jnp.sum(fg) > 0)
    losses = jnp.stack(losses)
    present = jnp.stack(present).astype(jnp.float32)
    n_present = jnp.sum(present)
    lov = jnp.where(n_present > 0,
                    jnp.sum(losses * present) / jnp.maximum(n_present, 1.0), 0.0)
    return ce, lov


if __name__ == "__main__":
    key = jax.random.PRNGKey(0)
    N, C = 1000, 8            # N points (non-multiple of tile -> exercises padding)
    k1, k2 = jax.random.split(key)
    outputs = jax.random.normal(k1, (N, C), dtype=jnp.float32)
    targets = jax.random.randint(k2, (N,), 0, C, dtype=jnp.int32)

    # SemLoss(w=[2.0, 1.5])
    loss = sem_loss(outputs, targets, ce_w=2.0, lov_w=1.5, tile_n=256)
    jax.block_until_ready(loss)

    ce_ref, lov_ref = _reference_sem_loss(outputs, targets)
    np.testing.assert_allclose(float(loss["sem_ce"]), 2.0 * float(ce_ref),
                               rtol=1e-3, atol=1e-3)
    np.testing.assert_allclose(float(loss["sem_lov"]), 1.5 * float(lov_ref),
                               rtol=1e-3, atol=1e-3)
    print("KERNEL_OK")
</pallas_src>

<mosaic_0001>
module attributes {stable_mosaic.version = 11 : i64} {
  func.func @kernel(%arg0: i32, %arg1: memref<8x256xf32, #tpu.memory_space<vmem>>, %arg2: memref<1x256xi32, #tpu.memory_space<vmem>>, %arg3: memref<8x256xf32, #tpu.memory_space<vmem>>, %arg4: memref<8x256xf32, #tpu.memory_space<vmem>>, %arg5: memref<1x128xf32, #tpu.memory_space<vmem>>) attributes {dimension_semantics = [#tpu.dimension_semantics<parallel>], iteration_bounds = array<i64: 4>, scalar_prefetch = 0 : i64, scratch_operands = 0 : i64, tpu.core_type = #tpu.core_type<tc>, window_params = [{transform_indices = @transform_0, window_bounds = array<i64: 8, 256>}, {transform_indices = @transform_1, window_bounds = array<i64: 1, 256>}, {transform_indices = @transform_2, window_bounds = array<i64: 8, 256>}, {transform_indices = @transform_3, window_bounds = array<i64: 8, 256>}, {transform_indices = @transform_4, window_bounds = array<i64: 1, 128>}]} {
    %c0 = arith.constant 0 : index
    %c0_0 = arith.constant 0 : index
    %0 = vector.load %arg1[%c0, %c0_0] : memref<8x256xf32, #tpu.memory_space<vmem>>, vector<8x256xf32>
    %c0_1 = arith.constant 0 : index
    %c0_2 = arith.constant 0 : index
    %1 = vector.load %arg2[%c0_1, %c0_2] : memref<1x256xi32, #tpu.memory_space<vmem>>, vector<1x256xi32>
    %cst = arith.constant dense<0xFF800000> : vector<256xf32>
    %2 = vector.multi_reduction <maximumf>, %0, %cst [0] : vector<8x256xf32> to vector<256xf32>
    %3 = vector.shape_cast %2 : vector<256xf32> to vector<1x256xf32>
    %4 = vector.broadcast %3 : vector<1x256xf32> to vector<8x256xf32>
    %5 = arith.subf %0, %4 : vector<8x256xf32>
    %6 = math.exp %5 : vector<8x256xf32>
    %cst_3 = arith.constant dense<0.000000e+00> : vector<256xf32>
    %7 = vector.multi_reduction <add>, %6, %cst_3 [0] : vector<8x256xf32> to vector<256xf32>
    %8 = vector.shape_cast %7 : vector<256xf32> to vector<1x256xf32>
    %9 = vector.broadcast %8 : vector<1x256xf32> to vector<8x256xf32>
    %10 = arith.divf %6, %9 : vector<8x256xf32>
    %11 = math.log %8 : vector<1x256xf32>
    %12 = vector.broadcast %11 : vector<1x256xf32> to vector<8x256xf32>
    %13 = arith.subf %5, %12 : vector<8x256xf32>
    %14 = tpu.iota {dimensions = array<i32: 0>} : vector<8x256xi32>
    %15 = vector.broadcast %1 : vector<1x256xi32> to vector<8x256xi32>
    %16 = arith.cmpi eq, %15, %14 : vector<8x256xi32>
    %17 = arith.extui %16 : vector<8x256xi1> to vector<8x256xi32>
    %18 = arith.sitofp %17 : vector<8x256xi32> to vector<8x256xf32>
    %19 = tpu.iota {dimensions = array<i32: 1>} : vector<1x256xi32>
    %c256_i32 = arith.constant 256 : i32
    %20 = arith.muli %arg0, %c256_i32 : i32
    %21 = vector.broadcast %20 : i32 to vector<1x256xi32>
    %22 = arith.addi %21, %19 : vector<1x256xi32>
    %c1000_i32 = arith.constant 1000 : i32
    %23 = vector.broadcast %c1000_i32 : i32 to vector<1x256xi32>
    %24 = arith.cmpi slt, %22, %23 : vector<1x256xi32>
    %25 = arith.extui %24 : vector<1x256xi1> to vector<1x256xi32>
    %26 = arith.sitofp %25 : vector<1x256xi32> to vector<1x256xf32>
    %27 = vector.broadcast %26 : vector<1x256xf32> to vector<8x256xf32>
    %28 = arith.mulf %18, %27 : vector<8x256xf32>
    %29 = arith.subf %18, %10 : vector<8x256xf32>
    %30 = math.absf %29 : vector<8x256xf32>
    %31 = vector.broadcast %26 : vector<1x256xf32> to vector<8x256xf32>
    %32 = arith.mulf %30, %31 : vector<8x256xf32>
    %c0_4 = arith.constant 0 : index
    %c0_5 = arith.constant 0 : index
    %33 = vector.load %arg3[%c0_4, %c0_5] : memref<8x256xf32, #tpu.memory_space<vmem>>, vector<8x256xf32>
    tpu.vector_store %arg3[%c0_4, %c0_5], %32 {strides = array<i32>} : memref<8x256xf32, #tpu.memory_space<vmem>>, vector<8x256xf32>,
    %c0_6 = arith.constant 0 : index
    %c0_7 = arith.constant 0 : index
    %34 = vector.load %arg4[%c0_6, %c0_7] : memref<8x256xf32, #tpu.memory_space<vmem>>, vector<8x256xf32>
    tpu.vector_store %arg4[%c0_6, %c0_7], %28 {strides = array<i32>} : memref<8x256xf32, #tpu.memory_space<vmem>>, vector<8x256xf32>,
    %35 = arith.mulf %18, %13 : vector<8x256xf32>
    %cst_8 = arith.constant dense<0.000000e+00> : vector<256xf32>
    %36 = vector.multi_reduction <add>, %35, %cst_8 [0] : vector<8x256xf32> to vector<256xf32>
    %37 = vector.shape_cast %36 : vector<256xf32> to vector<1x256xf32>
    %cst_9 = arith.constant 0.000000e+00 : f32
    %38 = vector.broadcast %cst_9 : f32 to vector<1x256xf32>
    %39 = arith.subf %38, %37 : vector<1x256xf32>
    %c0_i32 = arith.constant 0 : i32
    %40 = vector.broadcast %c0_i32 : i32 to vector<1x256xi32>
    %41 = arith.cmpi ne, %1, %40 : vector<1x256xi32>
    %42 = arith.andi %41, %24 : vector<1x256xi1>
    %43 = arith.extui %42 : vector<1x256xi1> to vector<1x256xi32>
    %44 = arith.sitofp %43 : vector<1x256xi32> to vector<1x256xf32>
    %45 = arith.mulf %39, %44 : vector<1x256xf32>
    %46 = vector.shape_cast %45 : vector<1x256xf32> to vector<1x1x256xf32>
    %cst_10 = arith.constant dense<0.000000e+00> : vector<1xf32>
    %47 = vector.multi_reduction <add>, %46, %cst_10 [1, 2] : vector<1x1x256xf32> to vector<1xf32>
    %48 = vector.shape_cast %47 : vector<1xf32> to vector<1x1x1xf32>
    %49 = vector.extract %48[0, 0, 0] : f32 from vector<1x1x1xf32>
    %50 = vector.shape_cast %44 : vector<1x256xf32> to vector<1x1x256xf32>
    %cst_11 = arith.constant dense<0.000000e+00> : vector<1xf32>
    %51 = vector.multi_reduction <add>, %50, %cst_11 [1, 2] : vector<1x1x256xf32> to vector<1xf32>
    %52 = vector.shape_cast %51 : vector<1xf32> to vector<1x1x1xf32>
    %53 = vector.extract %52[0, 0, 0] : f32 from vector<1x1x1xf32>
    %54 = tpu.iota {dimensions = array<i32: 1>} : vector<1x128xi32>
    %c0_i32_12 = arith.constant 0 : i32
    %55 = vector.broadcast %c0_i32_12 : i32 to vector<1x128xi32>
    %56 = arith.cmpi eq, %54, %55 : vector<1x128xi32>
    %c1_i32 = arith.constant 1 : i32
    %57 = vector.broadcast %c1_i32 : i32 to vector<1x128xi32>
    %58 = arith.cmpi eq, %54, %57 : vector<1x128xi32>
    %cst_13 = arith.constant 0.000000e+00 : f32
    %59 = vector.broadcast %53 : f32 to vector<1x128xf32>
    %60 = vector.broadcast %cst_13 : f32 to vector<1x128xf32>
    %61 = arith.select %58, %59, %60 : vector<1x128xi1>, vector<1x128xf32>
    %62 = vector.broadcast %49 : f32 to vector<1x128xf32>
    %63 = arith.select %56, %62, %61 : vector<1x128xi1>, vector<1x128xf32>
    %c0_14 = arith.constant 0 : index
    %c0_15 = arith.constant 0 : index
    %64 = vector.load %arg5[%c0_14, %c0_15] : memref<1x128xf32, #tpu.memory_space<vmem>>, vector<1x128xf32>
    tpu.vector_store %arg5[%c0_14, %c0_15], %63 {strides = array<i32>} : memref<1x128xf32, #tpu.memory_space<vmem>>, vector<1x128xf32>,
    return
  }
  func.func @transform_0(%arg0: i32) -> (i32, i32) {
    %c0_i32 = arith.constant 0 : i32
    %c0_i32_0 = arith.constant 0 : i32
    return %c0_i32, %arg0 : i32, i32
  }
  func.func @transform_1(%arg0: i32) -> (i32, i32) {
    %c0_i32 = arith.constant 0 : i32
    %c0_i32_0 = arith.constant 0 : i32
    return %c0_i32, %arg0 : i32, i32
  }
  func.func @transform_2(%arg0: i32) -> (i32, i32) {
    %c0_i32 = arith.constant 0 : i32
    %c0_i32_0 = arith.constant 0 : i32
    return %c0_i32, %arg0 : i32, i32
  }
  func.func @transform_3(%arg0: i32) -> (i32, i32) {
    %c0_i32 = arith.constant 0 : i32
    %c0_i32_0 = arith.constant 0 : i32
    return %c0_i32, %arg0 : i32, i32
  }
  func.func @transform_4(%arg0: i32) -> (i32, i32) {
    %c0_i32 = arith.constant 0 : i32
    %c0_i32_0 = arith.constant 0 : i32
    return %c0_i32, %arg0 : i32, i32
  }
}

</mosaic_0001>

<bundles_post_ra>
// kernel: tpu_custom_call.1
= control target key start
LH: loop header
LB: loop body
LE: loop exit
PB: predicated region body
PF: predicated region fallthrough
CT: control target
= control target key end

     0   :  { %10 = vsyncpa [#allocation3], 0  ;;  %s1275_s0 = inlined_call_operand.hbm [shape: f32[8,1024], index: 0, kind: input, shape index: {}]   ;;  %s1276_s1 = inlined_call_operand.hbm [shape: s32[1,1024], index: 1, kind: input, shape index: {}]   ;;  %s1277_s2 = inlined_call_operand.hbm [shape: f32[8,1024], index: 2, kind: output, shape index: {0}]   ;;  %s1278_s3 = inlined_call_operand.hbm [shape: f32[8,1024], index: 3, kind: output, shape index: {1}]   ;;  %s1279_s4 = inlined_call_operand.hbm [shape: f32[1,512], index: 4, kind: output, shape index: {2}]  }
   0x1   :  { %12 = vsyncpa [#allocation3 + $0x1], 0 }
   0x2   :  { %13 = vsyncpa [#allocation6], 0 }
   0x3   :  { %15 = vsyncpa [#allocation6 + $0x1], 0 }
   0x4   :  { %16 = vsyncpa [#allocation4], 0 }
   0x5   :  { %18 = vsyncpa [#allocation4 + $0x1], 0 }
   0x6   :  { %19 = vsyncpa [#allocation9], 0 }
   0x7   :  { %21 = vsyncpa [#allocation9 + $0x1], 0  ;;  %s977_s15 = smov 0   ;;  %s979_s16 = smov 0  }
   0x8   :  { %s981_s17 = smov 0   ;;  %s983_s18 = smov 0  }
   0x9 LB: > { %s998_s19 = sadd.s32 4294967295, %s942_s18   ;;  %s639_s20 = sadd.s32 4294967294, %s942_s18   ;;  %s942_s18 = sphi %s983_s18, %s1297_s18   ;;  %s938_s17 = sphi %s981_s17, %s1296_s17   ;;  %s934_s16 = sphi %s979_s16, %s1295_s16   ;;  %s930_s15 = sphi %s977_s15, %s1294_s15  }
   0xa   : > { %s1002_s21 = sadd.s32 1, %s942_s18   ;;  %s34_s22 = sadd.s32 1, %s938_s17 }
   0xb   : > { %s31_s23 = ssub.s32 %s942_s18, %s1002_s21  ;;  %p41_p0 = scmp.ne.s32.totalorder %s938_s17, %s934_s16 }
   0xc   : > { %p32_p1 = scmp.eq.s32.totalorder %s31_s23, 0  ;;  %p42_p2 = scmp.eq.s32.totalorder %s942_s18, 0 }
   0xd   : > { %p47_p3 = scmp.ne.s32.totalorder %s934_s16, %s930_s15  ;;  %p48_p4 = scmp.eq.s32.totalorder %s998_s19, 0 }
   0xe   : > { %s1014_s24 = scalar_select %p32_p1, %s938_s17, %s34_s22  }
   0xf   : > { %p1016_p5 = por %p42_p2, %p41_p0  ;;  %p1020_p6 = por %p48_p4, %p47_p3 }
  0x10   : > { %p97_p7 = scmp.eq.s32.totalorder %s998_s19, 3  ;;  %p103_p8 = scmp.eq.s32.totalorder %s639_s20, 3 }
  0x11   : > { %s1283_s26 = scalar_select %p1020_p6, 1, 0 }
  0x12   : > { %p703_p9 = scmp.lt.s32.totalorder %s942_s18, 4  ;;  %p1028_p10 = por %p97_p7, %p41_p0 }
  0x13   : > { %p1032_p11 = por %p103_p8, %p47_p3  ;;  %s1037_s29 = sand.u32 1, %s938_s17  }
  0x14   : > { %s1284_s27 = scalar_select %p1028_p10, 1, 0 }
  0x15   : > { %s1285_s28 = scalar_select %p1032_p11, 1, 0 }
  0x16   : > { %s668_s30 = sshll.u32 %s942_s18, 8  ;;  %s642_s5 = sshll.u32 %s1037_s29, 4 }
  0x17   : > { %s1044_s8 = scalar_lea.hbm %s1275_s0, %s668_s30  ;;  %s179_s9 = scalar_lea.vmem [#allocation2], %s642_s5 }
  0x18   : > { %s187_s10 = sshll.u32 %s179_s9, 4  ;;  %p1048_p12 = pnand %p703_p9, %p1016_p5  ;;  %s1052_s10 = int_to_ptr.vmem [resolvable:$true] %s187_s10 }
  0x19   : > { %s176_s12 = scalar_lea.sflag [#allocation3], %s1037_s29  ;;  %s752_s13 = scalar_lea.hbm %s1044_s8, 256 }
  0x1a   : > { %p753_p1 = scmp.ne.s32.totalorder %s1044_s8, %s752_s13  ;;  %p754_p2 = pneg %p1048_p12 }
  0x1b   : > { %s757_s23 = scalar_lea.hbm %s1275_s0, 1024  ;;  %p758_p5 = scmp.lt.u32.totalorder %s1044_s8, %s1275_s0 }
  0x1c   : > { %p755_p3 = pnand %p754_p2, %p753_p1  ;;  %p759_p7 = scmp.lt.u32.totalorder %s757_s23, %s752_s13 }
  0x1d   : > { %p761_p9 = scmp.lt.u32.totalorder %s752_s13, %s1044_s8 }
  0x1e   : > { %p756_p4 = pneg %p755_p3  ;;  %p760_p8 = por %p759_p7, %p758_p5 }
  0x20   : > { %p762_p13 = por %p761_p9, %p760_p8 }
  0x22   : > { %p763_p0 = pnand %p762_p13, %p756_p4 }
  0x24   : > { %766 = shalt.err (!%p763_p0)
}
  0x25   : > { %s767_s5 = scalar_lea.vmem %s1052_s10, 256  ;;  %s944_s6 = smov [#allocation2]  }
  0x26   : > { %p768_p1 = scmp.ne.s32.totalorder %s1052_s10, %s767_s5  ;;  %s772_s7 = sshll.u32 %s944_s6, 4  ;;  %s773_s7 = int_to_ptr.vmem [resolvable:$false] %s772_s7 }
  0x27   : > { %s774_s9 = scalar_lea.vmem %s773_s7, 512  ;;  %p775_p10 = scmp.lt.s32.totalorder %s1052_s10, %s773_s7 }
  0x28   : > { %p770_p3 = pnand %p768_p1, %p754_p2  ;;  %p776_p5 = scmp.lt.s32.totalorder %s774_s9, %s767_s5 }
  0x2a   : > { %p771_p11 = pneg %p770_p3  ;;  %p777_p7 = por %p776_p5, %p775_p10 }
  0x2c   : > { %p778_p8 = pnand %p777_p7, %p771_p11 }
  0x2e   : > { %781 = shalt.err (!%p778_p8)
}
  0x2f   : > { %689 = dma.hbm_to_vmem [thread:$0]  (!%p1048_p12), %s1044_s8, 256, %s1052_s10, %s176_s12  }
  0x30   : > { %p1287_p13 = scmp.lt.s32.totalorder %s942_s18, 5  ;;  %p1288_p0 = scmp.ge.s32.totalorder %s942_s18, 1 }
  0x31   : > { %s645_s14 = sshll.u32 %s1037_s29, 1  ;;  %s669_s22 = sshll.u32 %s942_s18, 5 }
  0x32   : > { %p1086_p4 = pnand %p1288_p0, %p1287_p13  ;;  %s1095_s30 = scalar_lea.hbm %s1276_s1, %s669_s22 }
  0x33   : > { %s198_s5 = scalar_lea.vmem [#allocation5], %s645_s14  ;;  %s195_s8 = scalar_lea.sflag [#allocation6], %s1037_s29 }
  0x34   : > { %s1289_s13 = scalar_select %p1086_p4, 1, 0 }
  0x35   : > { %s206_s6 = sshll.u32 %s198_s5, 4  ;;  %s782_s10 = scalar_lea.hbm %s1095_s30, 32  ;;  %s207_s6 = int_to_ptr.vmem [resolvable:$true] %s206_s6 }
  0x36   : > { %p783_p10 = scmp.ne.s32.totalorder %s1095_s30, %s782_s10  ;;  %s787_s9 = scalar_lea.hbm %s1276_s1, 128 }
  0x37   : > { %p788_p1 = scmp.lt.u32.totalorder %s1095_s30, %s1276_s1  ;;  %p789_p3 = scmp.lt.u32.totalorder %s787_s9, %s782_s10 }
  0x38   : > { %p785_p11 = pnand %p783_p10, %p754_p2  ;;  %p791_p7 = scmp.lt.u32.totalorder %s782_s10, %s1095_s30 }
  0x39   : > { %p790_p5 = por %p789_p3, %p788_p1 }
  0x3a   : > { %p786_p9 = pneg %p785_p11 }
  0x3b   : > { %p792_p8 = por %p791_p7, %p790_p5 }
  0x3d   : > { %p793_p13 = pnand %p792_p8, %p786_p9 }
  0x3f   : > { %796 = shalt.err (!%p793_p13)
}
  0x40   : > { %s797_s29 = scalar_lea.vmem %s207_s6, 32  ;;  %s945_s14 = smov [#allocation5]  }
  0x41   : > { %p798_p0 = scmp.ne.s32.totalorder %s207_s6, %s797_s29  ;;  %s802_s25 = sshll.u32 %s945_s14, 4  ;;  %s803_s25 = int_to_ptr.vmem [resolvable:$false] %s802_s25 }
  0x42   : > { %s804_s5 = scalar_lea.vmem %s803_s25, 64  ;;  %p805_p6 = scmp.lt.s32.totalorder %s207_s6, %s803_s25 }
  0x43   : > { %p800_p10 = pnand %p798_p0, %p754_p2  ;;  %p806_p4 = scmp.lt.s32.totalorder %s804_s5, %s797_s29 }
  0x45   : > { %p801_p11 = pneg %p800_p10  ;;  %p807_p1 = por %p806_p4, %p805_p6 }
  0x47   : > { %p808_p3 = pnand %p807_p1, %p801_p11 }
  0x49   : > { %811 = shalt.err (!%p808_p3)
}
  0x4a   : > { %692 = dma.hbm_to_vmem [thread:$0]  (!%p1048_p12), %s1095_s30, 32, %s207_s6, %s195_s8  }
  0x4b   : > { %p1290_p9 = scmp.ne.s32.totalorder %s1289_s13, 0 }
  0x4c   : > { %s1120_s10 = sand.u32 (!%p1290_p9), 1, %s934_s16   ;;  %p1291_p6 = scmp.ne.s32.totalorder (!%p1290_p9), %s1283_s26, 0 }
  0x4d   : > { %215 = sbr.rel (%p1290_p9) target bundleno = 391 (0x187), region = 28  ;;  %s1123_s12 = sshll.u32 (!%p1290_p9), %s1120_s10, 4 }
  0x4e   : > { %s218_s7 = scalar_lea.sflag (!%p1290_p9), [#allocation3], %s1120_s10  ;;  %s221_s9 = scalar_lea.vmem (!%p1290_p9), [#allocation2], %s1123_s12 }
  0x54   : > { %913 = dma.done.wait (%p1291_p6), %s218_s7, 256  }
  0x55   : > { %915 = vsyncadd (%p1291_p6), %s218_s7, 4294967040  ;;  %s650_s11 = sshll.u32 %s1120_s10, 1  ;;  %s227_s13 = scalar_lea.sflag [#allocation6], %s1120_s10 }
  0x56   : > { %s1133_s30 = scalar_lea.vmem [#allocation5], %s650_s11 }
  0x57   : > { %917 = dma.done.wait (%p1291_p6), %s227_s13, 32  }
  0x58   : > { %919 = vsyncadd (%p1291_p6), %s227_s13, 4294967264  ;;  %v273_v0 = vld [vmem:[%s221_s9] sm:$0xff]  ;;  %v274_v1 = vld [vmem:[%s221_s9 + $0x8] sm:$0xff]  ;;  %v316_v18 = vlaneseq  ;;  %s1148_s26 = sshll.u32 %s998_s19, 8  ;;  %v946_v38 = vmov 1966171168  }
  0x59   : > { %v276_v2 = vrot.slane %v273_v0, 4  ;;  %v282_v3 = vrot.slane %v274_v1, 4  ;;  %v336_v29 = vstv %s1148_s26  ;;  %v376_v39 = vunpack.c.l.s4 %v946_v38  ;;  %v275_v42 = vld [vmem:[%s1133_s30] sm:$0x3]  ;;  %s443_s6 = sand.u32 1, %s998_s19   ;;  %s262_s8 = scalar_lea.vmem [#allocation8], %s1123_s12 }
  0x5a   : > { %v1145_v22 = vand.u32 127, %v316_v18  ;;  %v317_v36 = vshrl.u32 %v316_v18, 7  ;;  %v947_v45 = vmov 0   ;;  %v948_v58 = vmov 0.0   ;;  %s476_s22 = sshll.u32 %s262_s8, 4  ;;  %s1176_s14 = scalar_lea.hbm %s1278_s3, %s1148_s26  ;;  %s477_s22 = int_to_ptr.vmem [resolvable:$true] %s476_s22 }
  0x5b   : > { %v277_v4 = vmax.f32 %v273_v0, %v276_v2  ;;  %v283_v5 = vmax.f32 %v274_v1, %v282_v3  ;;  %v377_v43 = vunpack.c.0.s8 %v376_v39  ;;  %vm373_vm4 = vcmp.ne.s32.totalorder %v275_v42, 0  ;;  %s1178_s25 = scalar_lea.sflag [#allocation9], %s443_s6  ;;  %s812_s5 = scalar_lea.vmem %s477_s22, 256 }
  0x5c   : > { %v334_v27 = vadd.s32 128, %v1145_v22  ;;  %v1153_v33 = vadd.s32 %v336_v29, %v1145_v22  ;;  %v320_v41 = vsub.s32 0, %v317_v36  ;;  %v324_v44 = vsub.s32 1, %v317_v36  ;;  %p813_p12 = scmp.ne.s32.totalorder %s477_s22, %s812_s5  ;;  %p1292_p2 = scmp.ne.s32.totalorder %s1284_s27, 0 }
  0x5d   : > { %v278_v6 = vrot.slane %v277_v4, 2  ;;  %v284_v7 = vrot.slane %v283_v5, 2  ;;  %v380_v50 = vsub.s32 %v377_v43, %v317_v36  ;;  %vm406_vm7 = vcmask 1040384   ;;  %s949_s7 = smov [#allocation8]  }
  0x5e   : > { %v1155_v34 = vadd.s32 %v336_v29, %v334_v27  ;;  %vm339_vm0 = vcmp.lt.s32.totalorder %v1153_v33, 1000  ;;  %v321_v48 = vrot.slane %v275_v42, %v320_v41  ;;  %v325_v51 = vrot.slane %v275_v42, %v324_v44  ;;  %p814_p4 = pnand %p813_p12, %p1292_p2  ;;  %s816_s9 = sshll.u32 %s949_s7, 4  ;;  %s817_s9 = int_to_ptr.vmem [resolvable:$false] %s816_s9 }
  0x5f   : > { %v279_v8 = vmax.f32 %v277_v4, %v278_v6  ;;  %v285_v9 = vmax.f32 %v283_v5, %v284_v7  ;;  %v341_v46 = vsel %vm339_vm0, 1, %v947_v45  ;;  %s818_s11 = scalar_lea.vmem %s817_s9, 512  ;;  %p819_p7 = scmp.lt.s32.totalorder %s477_s22, %s817_s9 }
  0x60   : > { %vm340_vm1 = vcmp.lt.s32.totalorder %v1155_v34, 1000  ;;  %vm326_vm2 = vcmp.eq.s32.totalorder %v321_v48, %v317_v36  ;;  %vm327_vm3 = vcmp.eq.s32.totalorder %v325_v51, %v317_v36  ;;  %p815_p5 = pneg %p814_p4  ;;  %p820_p8 = scmp.lt.s32.totalorder %s818_s11, %s812_s5 }
  0x61   : > { %v280_v10 = vrot.slane %v279_v8, 1  ;;  %v286_v11 = vrot.slane %v285_v9, 1  ;;  %v342_v47 = vsel %vm340_vm1, 1, %v947_v45  ;;  %v653_v59 = vsel %vm326_vm2, 1.0, %v948_v58 }
  0x62   : > { %v374_v49 = vcombine.low %v341_v46, %v342_v47  ;;  %v654_v63 = vsel %vm327_vm3, 1.0, %v948_v58  ;;  %v657_v38 = vsel %vm340_vm1, 1.0, %v948_v58  ;;  %p821_p13 = por %p820_p8, %p819_p7 }
  0x63   : > { %v281_v12 = vmax.f32 %v279_v8, %v280_v10  ;;  %v287_v13 = vmax.f32 %v285_v9, %v286_v11 }
  0x64   : > { %v381_v53 = vrot.slane %v374_v49, %v380_v50  ;;  %p822_p0 = pnand %p821_p13, %p815_p5 }
  0x65   : > { %v1139_v14 = vsub.f32 %v273_v0, %v281_v12  ;;  %v1141_v15 = vsub.f32 %v274_v1, %v287_v13 }
  0x66   : > { %v388_v0 = vrot.slane %v381_v53, %v380_v50 }
  0x67   : > { %v290_v16 = vmul.f32 1.442695, %v1139_v14  ;;  %v292_v17 = vmul.f32 1.442695, %v1141_v15 }
  0x68   : > { %vm389_vm5 = vcmp.ne.s32.totalorder %v388_v0, 0 }
  0x69   : > { %740 = vpow2.f32 %v290_v16  ;;  %vm390_vm6 = vmand %vm373_vm4, %vm389_vm5 }
  0x6a   : > { %742 = vpow2.f32 %v292_v17  ;;  %v658_v12 = vsel %vm390_vm6, 1.0, %v948_v58 }
  0x6b   : > { %v397_v18 = vrot.slane %v658_v12, %v320_v41 }
  0x6d   : > { %v419_v27 = vsel %vm406_vm7, %v397_v18, 0.0 }
  0x73   : > { %v741_v19 = vpop.eup %740 }
  0x74   : > { %v743_v20 = vpop.eup %742  ;;  %v294_v21 = vrot.slane %v741_v19, 4 }
  0x75   : > { %v300_v23 = vrot.slane %v743_v20, 4 }
  0x76   : > { %v295_v24 = vadd.f32 %v741_v19, %v294_v21 }
  0x77   : > { %v301_v25 = vadd.f32 %v743_v20, %v300_v23 }
  0x78   : > { %v296_v26 = vrot.slane %v295_v24, 2 }
  0x79   : > { %v302_v28 = vrot.slane %v301_v25, 2 }
  0x7a   : > { %v297_v30 = vadd.f32 %v296_v26, %v295_v24 }
  0x7b   : > { %v303_v31 = vadd.f32 %v302_v28, %v301_v25 }
  0x7c   : > { %v298_v32 = vrot.slane %v297_v30, 1 }
  0x7d   : > { %v304_v35 = vrot.slane %v303_v31, 1 }
  0x7e   : > { %v299_v37 = vadd.f32 %v298_v32, %v297_v30 }
  0x7f   : > { %v305_v40 = vadd.f32 %v304_v35, %v303_v31 }
  0x80   : > { %744 = vlog2.f32 %v299_v37 }
  0x81   : > { %746 = vrcp.f32 %v305_v40 }
  0x82   : > { %748 = vlog2.f32 %v305_v40  ;;  %v346_v40 = vmul.f32 %v657_v38, %v654_v63 }
  0x83   : > { %750 = vrcp.f32 %v299_v37  ;;  %v656_v37 = vsel %vm339_vm0, 1.0, %v948_v58 }
  0x84   : > { %v345_v39 = vmul.f32 %v656_v37, %v653_v59  ;;  %356 = vst [vmem:[%s262_s8 + $0x8] sm:$0xff] %v346_v40 }
  0x86   : > { %355 = vst [vmem:[%s262_s8] sm:$0xff] %v345_v39 }
  0x8a   : > { %v745_v52 = vpop.eup %744 }
  0x8b   : > { %v747_v54 = vpop.eup %746  ;;  %v311_v55 = vmul.f32 0.6931472, %v745_v52 }
  0x8c   : > { %v749_v56 = vpop.eup %748  ;;  %v309_v57 = vmul.f32 %v747_v54, %v743_v20  ;;  %v401_v20 = vrot.slane %v658_v12, %v324_v44 }
  0x8d   : > { %v751_v60 = vpop.eup %750  ;;  %v313_v61 = vmul.f32 0.6931472, %v749_v56  ;;  %v314_v62 = vsub.f32 %v1139_v14, %v311_v55 }
  0x8e   : > { %v307_v1 = vmul.f32 %v751_v60, %v741_v19  ;;  %v420_v28 = vsel %vm406_vm7, %v401_v20, 0.0  ;;  %v348_v31 = vsub.f32 %v654_v63, %v309_v57 }
  0x8f   : > { %v315_v2 = vsub.f32 %v1141_v15, %v313_v61  ;;  %v357_v3 = vmul.f32 %v653_v59, %v314_v62  ;;  %v421_v30 = vadd.f32 %v420_v28, %v419_v27 }
  0x90   : > { %v347_v32 = vsub.f32 %v653_v59, %v307_v1  ;;  %v350_v35 = vand.u32 2147483647, %v348_v31 }
  0x91   : > { %v358_v4 = vmul.f32 %v654_v63, %v315_v2  ;;  %v359_v5 = vrot.slane %v357_v3, 4 }
  0x92   : > { %v349_v36 = vand.u32 2147483647, %v347_v32  ;;  %v352_v42 = vmul.f32 %v657_v38, %v350_v35 }
  0x93   : > { %v360_v6 = vadd.f32 %v359_v5, %v357_v3  ;;  %v365_v7 = vrot.slane %v358_v4, 4 }
  0x94   : > { %v351_v41 = vmul.f32 %v656_v37, %v349_v36 }
  0x95   : > { %v361_v8 = vrot.slane %v360_v6, 2  ;;  %v366_v9 = vadd.f32 %v365_v7, %v358_v4 }
  0x97   : > { %v362_v10 = vadd.f32 %v361_v8, %v360_v6  ;;  %v367_v11 = vrot.slane %v366_v9, 2 }
  0x99   : > { %v363_v13 = vrot.slane %v362_v10, 1  ;;  %v368_v14 = vadd.f32 %v367_v11, %v366_v9 }
  0x9b   : > { %v364_v16 = vadd.f32 %v363_v13, %v362_v10  ;;  %v369_v17 = vrot.slane %v368_v14, 1 }
  0x9d   : > { %v370_v19 = vadd.f32 %v369_v17, %v368_v14  ;;  %v371_v15 = vsub.f32 0.0, %v364_v16 }
  0x9f   : > { %v372_v21 = vsub.f32 0.0, %v370_v19  ;;  %v404_v23 = vmul.f32 %v397_v18, %v371_v15 }
  0xa1   : > { %v405_v24 = vmul.f32 %v401_v20, %v372_v21  ;;  %v407_v25 = vsel %vm406_vm7, %v404_v23, 0.0 }
  0xa3   : > { %v408_v26 = vsel %vm406_vm7, %v405_v24, 0.0 }
  0xa4   : > { %v409_v29 = vadd.f32 %v408_v26, %v407_v25 }
  0xa6   : > { %410 = vadd.xlane.f32.xlu0 %v409_v29 }
  0xaa   : > { %422 = vadd.xlane.f32.xlu0 %v421_v30 }
  0xab   : > { %825 = shalt.err (!%p822_p0)
}
  0xac   : > { %s826_s13 = scalar_lea.hbm %s1176_s14, 256  ;;  %s830_s8 = scalar_lea.hbm %s1278_s3, 1024 }
  0xad   : > { %p827_p10 = scmp.ne.s32.totalorder %s1176_s14, %s826_s13  ;;  %p831_p3 = scmp.lt.u32.totalorder %s1176_s14, %s1278_s3 }
  0xae   : > { %p832_p9 = scmp.lt.u32.totalorder %s830_s8, %s826_s13  ;;  %p834_p12 = scmp.lt.u32.totalorder %s826_s13, %s1176_s14 }
  0xaf   : > { %p828_p11 = pnand %p827_p10, %p1292_p2 }
  0xb0   : > { %p833_p6 = por %p832_p9, %p831_p3 }
  0xb1   : > { %p829_p1 = pneg %p828_p11 }
  0xb2   : > { %p835_p4 = por %p834_p12, %p833_p6 }
  0xb4   : > { %p836_p5 = pnand %p835_p4, %p829_p1 }
  0xb6   : > { %839 = shalt.err (!%p836_p5)
}
  0xb7   : > { %681 = dma.vmem_to_hbm [thread:$0]  (%p1292_p2), %s477_s22, 256, %s1176_s14, %s1178_s25  }
  0xb8   : > { %s255_s5 = scalar_lea.vmem [#allocation7], %s1123_s12  ;;  %s1203_s11 = scalar_lea.hbm %s1277_s2, %s1148_s26 }
  0xb9   : > { %353 = vst [vmem:[%s255_s5] sm:$0xff] %v351_v41  ;;  %354 = vst [vmem:[%s255_s5 + $0x8] sm:$0xff] %v352_v42  ;;  %s462_s13 = sshll.u32 %s255_s5, 4  ;;  %s439_s30 = scalar_lea.sflag [#allocation4], %s1120_s10  ;;  %s463_s13 = int_to_ptr.vmem [resolvable:$true] %s462_s13 }
  0xba   : > { %s840_s6 = scalar_lea.vmem %s463_s13, 256  ;;  %s950_s8 = smov [#allocation7]  }
  0xbb   : > { %p841_p7 = scmp.ne.s32.totalorder %s463_s13, %s840_s6  ;;  %s844_s23 = sshll.u32 %s950_s8, 4  ;;  %s845_s23 = int_to_ptr.vmem [resolvable:$false] %s844_s23 }
  0xbc   : > { %s846_s22 = scalar_lea.vmem %s845_s23, 512  ;;  %p847_p0 = scmp.lt.s32.totalorder %s463_s13, %s845_s23 }
  0xbd   : > { %p842_p8 = pnand %p841_p7, %p1292_p2  ;;  %p848_p10 = scmp.lt.s32.totalorder %s846_s22, %s840_s6 }
  0xbf   : > { %p843_p13 = pneg %p842_p8  ;;  %p849_p11 = por %p848_p10, %p847_p0 }
  0xc1   : > { %p850_p1 = pnand %p849_p11, %p843_p13 }
  0xc3   : > { %853 = shalt.err (!%p850_p1)
}
  0xc4   : > { %s854_s12 = scalar_lea.hbm %s1203_s11, 256  ;;  %s858_s29 = scalar_lea.hbm %s1277_s2, 1024 }
  0xc5   : > { %p855_p3 = scmp.ne.s32.totalorder %s1203_s11, %s854_s12  ;;  %p859_p12 = scmp.lt.u32.totalorder %s1203_s11, %s1277_s2 }
  0xc6   : > { %p860_p4 = scmp.lt.u32.totalorder %s858_s29, %s854_s12  ;;  %p862_p7 = scmp.lt.u32.totalorder %s854_s12, %s1203_s11 }
  0xc7   : > { %p856_p9 = pnand %p855_p3, %p1292_p2 }
  0xc8   : > { %p861_p5 = por %p860_p4, %p859_p12 }
  0xc9   : > { %p857_p6 = pneg %p856_p9 }
  0xca   : > { %p863_p8 = por %p862_p7, %p861_p5 }
  0xcc   : > { %p864_p13 = pnand %p863_p8, %p857_p6 }
  0xce   : > { %867 = shalt.err (!%p864_p13)
}
  0xcf   : > { %680 = dma.vmem_to_hbm [thread:$0]  (%p1292_p2), %s463_s13, 256, %s1203_s11, %s439_s30   ;;  %vm432_vm8 = vcmp.eq.s32.totalorder %v1145_v22, 1  ;;  %vm431_vm9 = vcmp.eq.s32.totalorder %v1145_v22, 0 }
  0xd0   : > { %s268_s9 = scalar_lea.vmem [#allocation10], %s1120_s10  ;;  %s665_s30 = sshll.u32 %s998_s19, 4 }
  0xd1   : > { %s489_s11 = sshll.u32 %s268_s9, 4  ;;  %s1230_s22 = scalar_lea.hbm %s1279_s4, %s665_s30  ;;  %s1232_s11 = int_to_ptr.vmem [resolvable:$true] %s489_s11 }
  0xd2   : > { %s868_s10 = scalar_lea.vmem %s1232_s11, 16  ;;  %s951_s19 = smov [#allocation10]  }
  0xd3   : > { %p869_p0 = scmp.ne.s32.totalorder %s1232_s11, %s868_s10  ;;  %s872_s12 = sshll.u32 %s951_s19, 4  ;;  %s873_s12 = int_to_ptr.vmem [resolvable:$false] %s872_s12 }
  0xd4   : > { %s874_s26 = scalar_lea.vmem %s873_s12, 32  ;;  %p875_p1 = scmp.lt.s32.totalorder %s1232_s11, %s873_s12 }
  0xd5   : > { %p870_p10 = pnand %p869_p0, %p1292_p2  ;;  %p876_p3 = scmp.lt.s32.totalorder %s874_s26, %s868_s10 }
  0xd7   : > { %p871_p11 = pneg %p870_p10  ;;  %p877_p9 = por %p876_p3, %p875_p1 }
  0xd9   : > { %p878_p6 = pnand %p877_p9, %p871_p11 }
 0x133   : > { %v411_v33 = vpop.xlane.xlu0 %410 }
 0x134   : > { %v412_v34 = vrot.slane %v411_v33, 4 }
 0x136   : > { %v413_v43 = vadd.f32 %v412_v34, %v411_v33 }
 0x137   : > { %v423_v44 = vpop.xlane.xlu0 %422 }
 0x138   : > { %v414_v45 = vrot.slane %v413_v43, 2  ;;  %v424_v46 = vrot.slane %v423_v44, 4 }
 0x13a   : > { %v425_v47 = vadd.f32 %v424_v46, %v423_v44  ;;  %v415_v48 = vadd.f32 %v414_v45, %v413_v43 }
 0x13c   : > { %v426_v49 = vrot.slane %v425_v47, 2  ;;  %v416_v50 = vrot.slane %v415_v48, 1 }
 0x13e   : > { %v427_v51 = vadd.f32 %v426_v49, %v425_v47  ;;  %v417_v52 = vadd.f32 %v416_v50, %v415_v48 }
 0x140   : > { %672 = vpush %v417_v52  ;;  %v428_v53 = vrot.slane %v427_v51, 1 }
 0x142   : > { %v429_v54 = vadd.f32 %v428_v53, %v427_v51 }
 0x144   : > { %674 = vpush %v429_v54 }
 0x171   : > { %s673_s13 = spop %672 }
 0x172   : > { %v435_v56 = vstv %s673_s13 }
 0x175   : > { %s675_s6 = spop %674 }
 0x176   : > { %v433_v55 = vstv %s675_s6 }
 0x177   : > { %v434_v57 = vsel %vm432_vm8, %v433_v55, 0.0 }
 0x178   : > { %v436_v58 = vsel %vm431_vm9, %v435_v56, %v434_v57 }
 0x179   : > { %437 = vst [vmem:[%s268_s9] sm:$0x1] %v436_v58 }
 0x17a   : > { %881 = shalt.err (!%p878_p6)
}
 0x17b   : > { %s882_s14 = scalar_lea.hbm %s1230_s22, 16  ;;  %s886_s7 = scalar_lea.hbm %s1279_s4, 64 }
 0x17c   : > { %p883_p12 = scmp.ne.s32.totalorder %s1230_s22, %s882_s14  ;;  %p887_p7 = scmp.lt.u32.totalorder %s1230_s22, %s1279_s4 }
 0x17d   : > { %p888_p8 = scmp.lt.u32.totalorder %s886_s7, %s882_s14  ;;  %p890_p0 = scmp.lt.u32.totalorder %s882_s14, %s1230_s22 }
 0x17e   : > { %p884_p4 = pnand %p883_p12, %p1292_p2 }
 0x17f   : > { %p889_p13 = por %p888_p8, %p887_p7 }
 0x180   : > { %p885_p5 = pneg %p884_p4 }
 0x181   : > { %p891_p10 = por %p890_p0, %p889_p13 }
 0x183   : > { %p892_p11 = pnand %p891_p10, %p885_p5 }
 0x185   : > { %895 = shalt.err (!%p892_p11)
}
 0x186   : > { %682 = dma.vmem_to_hbm [thread:$0]  (%p1292_p2), %s1232_s11, 16, %s1230_s22, %s1178_s25  }
 0x187 PF: > { %p704_p1 = scmp.ge.s32.totalorder %s942_s18, 2  ;;  %s501_s30 = sand.u32 1, %s930_s15  }
 0x188   : > { %p1293_p3 = scmp.ne.s32.totalorder %s1285_s28, 0  ;;  %s502_s6 = scalar_lea.sflag [#allocation4], %s501_s30 }
 0x18a   : > { %p694_p9 = pnand %p704_p1, %p1293_p3 }
 0x18c   : > { %921 = dma.done.wait (!%p694_p9), %s502_s6, 256  }
 0x18d   : > { %923 = vsyncadd (!%p694_p9), %s502_s6, 4294967040  ;;  %s510_s8 = sand.u32 1, %s639_s20  }
 0x18e   : > { %s511_s23 = scalar_lea.sflag [#allocation9], %s510_s8 }
 0x18f   : > { %925 = dma.done.wait (!%p694_p9), %s511_s23, 272  }
 0x190   : > { %927 = vsyncadd (!%p694_p9), %s511_s23, 4294967024  ;;  %p24_p2 = scmp.ge.s32.totalorder %s1002_s21, 6   ;;  %s1294_s15 = smov %s934_s16 }
 0x191   : > { %s1295_s16 = smov %s938_s17  ;;  %s1296_s17 = smov %s1014_s24 }
 0x192   : > { %s1297_s18 = smov %s1002_s21  ;;  %26 = sbr.rel (!%p24_p2) target bundleno = 9 (0x9), region = 118 }
 0x199   :  { %524 = vsyncpa [#allocation3], 1 }
 0x19a   :  { %526 = vsyncpa [#allocation3 + $0x1], 1 }
 0x19b   :  { %527 = vsyncpa [#allocation6], 1 }
 0x19c   :  { %529 = vsyncpa [#allocation6 + $0x1], 1 }
 0x19d   :  { %530 = vsyncpa [#allocation4], 1 }
 0x19e   :  { %532 = vsyncpa [#allocation4 + $0x1], 1 }
 0x19f   :  { %533 = vsyncpa [#allocation9], 1 }
 0x1a0   :  { %535 = vsyncpa [#allocation9 + $0x1], 1 }

</bundles_post_ra>
